<compile_context>
chip_gen: v7x
topology: tpu7x:2x2x1
jax: 0.10.0
libtpu: 0.0.40
codegen_flags: <defaults>
</compile_context>

<pallas_src>
import numpy as np
import jax
import jax.numpy as jnp
from jax.experimental import pallas as pl
from jax.experimental.pallas import tpu as pltpu

HISTORY_TIMES = np.array([4, 8, 16, 32, 48, 64, 96, 128])
NUM_ATTN = len(HISTORY_TIMES)                 # 8
NUM_OUTPUT = 12
TIME_AS_INPUT_SIZE = 6
NUM_INPUT = NUM_OUTPUT + TIME_AS_INPUT_SIZE   # 18
H_READ = 100                                  # num_hidden_read
HP = 128                                      # lane-padded gate width
HIST_LEN = int(HISTORY_TIMES.max())           # 128
# index_select(new_history, t-1) == old_history[t-2] for every tap (all t >= 4)
TAPS = [int(t) - 2 for t in HISTORY_TIMES]


def history_kernel(x_ref, hist_ref, wi_ref, b_ref, lw_ref, lb_ref,
                   read_ref, newh_ref):
    f32 = jnp.float32
    bf16 = jnp.bfloat16
    B = x_ref.shape[1]

    x = x_ref[0]                                              # (B, 18) f32

    # ---- read-LSTM step from h0 = c0 = 0 (f gate and W_hh are dead) --------
    # wi_ref: (18, 3*128) bf16 (gates i, g, o, each lane-padded to 128 cols so
    # the padded columns give i=0.5, g=0, o=0.5 -> h_pad == 0 exactly).
    gates = jnp.dot(x.astype(bf16), wi_ref[...],
                    preferred_element_type=f32) + b_ref[...]  # (B, 384) f32
    i = jax.nn.sigmoid(gates[:, 0 * HP:1 * HP])
    g = jnp.tanh(gates[:, 1 * HP:2 * HP])
    o = jax.nn.sigmoid(gates[:, 2 * HP:3 * HP])
    h = o * jnp.tanh(i * g)                                   # (B, 128) f32

    # ---- attention over the 8 history taps (read_linear + softmax) ---------
    # No logits-max subtraction: weights ~ U(+-0.1), |h| < 1 -> |logits| ~ O(1).
    logits = jnp.dot(h.astype(bf16), lw_ref[...],
                     preferred_element_type=f32) + lb_ref[...]    # (B, 8)
    e = jnp.exp(logits)
    attn = e * pl.reciprocal(jnp.sum(e, axis=-1, keepdims=True), approx=True)

    # ---- history shift + attention-weighted read, folded into the kernel ---
    # Per-batch (B is tiny and static); everything stays in the history's
    # native (rows, 12) layout so no cross-layout reshapes are needed.
    # TODO(synk): for large B, replace this unrolled loop with a batch grid
    # axis (dimension_semantics=("parallel",)) sized for the 64 MiB VMEM cap
    # on v7x, and consider bf16 gate nonlinearities on v6e/v7x only.
    for b in range(B):
        # new_history[b, 0]  = current notes
        # new_history[b, k]  = history[b, k-1]   (k >= 1)
        newh_ref[b] = pltpu.roll(hist_ref[b], shift=1, axis=0)    # (128, 12)
        newh_ref[b, 0:1, :] = x[b:b + 1, :NUM_OUTPUT]             # overwrite row 0

        # read[b] = sum_k attn[b, k] * old_history[b, HISTORY_TIMES[k]-2]
        read_b = attn[b:b + 1, 0:1] * hist_ref[b, TAPS[0]:TAPS[0] + 1, :]
        for k in range(1, NUM_ATTN):
            read_b = read_b + attn[b:b + 1, k:k + 1] * hist_ref[b, TAPS[k]:TAPS[k] + 1, :]
        read_ref[0, b:b + 1, :] = read_b                          # (1, 12)


def history_forward(params, x, history):
    """x: (1, B, 18) (PyTorch seq-major), history: (B, 128, 12).

    Returns (read (1, B, 12), shifted history (B, 128, 12))."""
    B = x.shape[1]
    vmem = pl.BlockSpec(memory_space=pltpu.MemorySpace.VMEM)
    args = (x, history,
            params["wi_igo"], params["b_igo"],
            params["lw_pad"], params["lb_row"])
    # TODO(synk): for a production stepping loop, donate `history` and alias it
    # to the second output (input_output_aliases), or better, switch to a
    # circular history buffer with a write cursor so the per-step update is
    # O(B*12) instead of O(B*128*12).
    read, new_history = pl.pallas_call(
        history_kernel,
        out_shape=(jax.ShapeDtypeStruct((1, B, NUM_OUTPUT), jnp.float32),
                   jax.ShapeDtypeStruct((B, HIST_LEN, NUM_OUTPUT), jnp.float32)),
        in_specs=[vmem] * len(args),
        out_specs=(vmem, vmem),
    )(*args)
    return read, new_history


def make_params(key):
    """PyTorch-layout parameters plus the kernel-side prepped versions."""
    ks = jax.random.split(key, 6)
    s = 1.0 / np.sqrt(H_READ)
    w_ih = jax.random.uniform(ks[0], (4 * H_READ, NUM_INPUT), jnp.float32, -s, s)
    w_hh = jax.random.uniform(ks[1], (4 * H_READ, H_READ), jnp.float32, -s, s)  # dead (h0 = 0)
    b_ih = jax.random.uniform(ks[2], (4 * H_READ,), jnp.float32, -s, s)
    b_hh = jax.random.uniform(ks[3], (4 * H_READ,), jnp.float32, -s, s)
    lin_w = jax.random.uniform(ks[4], (NUM_ATTN, H_READ), jnp.float32, -s, s)
    lin_b = jax.random.uniform(ks[5], (NUM_ATTN,), jnp.float32, -s, s)

    # Drop the dead f gate and W_hh, transpose to (in, out), lane-pad each gate
    # to 128 columns (pad cols -> i=0.5, g=0, o=0.5 -> h_pad == 0). MXU operands
    # are cast to bf16 (accumulation stays f32); biases stay f32.
    b = b_ih + b_hh
    w_cols, b_cols = [], []
    for gk in (0, 2, 3):                       # PyTorch gate order i, f, g, o
        w = w_ih[gk * H_READ:(gk + 1) * H_READ, :].T          # (18, 100)
        w_cols.append(jnp.pad(w, ((0, 0), (0, HP - H_READ))))
        b_cols.append(jnp.pad(b[gk * H_READ:(gk + 1) * H_READ], (0, HP - H_READ)))
    wi_igo = jnp.concatenate(w_cols, axis=1).astype(jnp.bfloat16)             # (18, 384)
    b_igo = jnp.concatenate(b_cols)[None, :]                                  # (1, 384) f32
    lw_pad = jnp.pad(lin_w.T, ((0, HP - H_READ), (0, 0))).astype(jnp.bfloat16)  # (128, 8)
    lb_row = lin_b[None, :]                                                   # (1, 8) f32

    return dict(w_ih=w_ih, w_hh=w_hh, b_ih=b_ih, b_hh=b_hh,
                lin_w=lin_w, lin_b=lin_b,
                wi_igo=wi_igo, b_igo=b_igo, lw_pad=lw_pad, lb_row=lb_row)


def reference_forward(params, x, history):
    """Pure-JAX (f32) mirror of History.forward with the fresh zero hidden state."""
    x0 = x[0]
    H = H_READ
    gates = x0 @ params["w_ih"].T + params["b_ih"] + params["b_hh"]   # h0 = c0 = 0
    i = jax.nn.sigmoid(gates[:, 0 * H:1 * H])
    g = jnp.tanh(gates[:, 2 * H:3 * H])
    o = jax.nn.sigmoid(gates[:, 3 * H:4 * H])
    h = o * jnp.tanh(i * g)
    attn = jax.nn.softmax(h @ params["lin_w"].T + params["lin_b"], axis=-1)
    new_history = jnp.concatenate([x0[:, None, :NUM_OUTPUT], history[:, :-1]], axis=1)
    variants = new_history[:, HISTORY_TIMES - 1, :]                   # (B, 8, 12)
    read = jnp.einsum("bk,bkd->bd", attn, variants)
    return read[None], new_history


if __name__ == "__main__":
    key = jax.random.PRNGKey(0)
    kp, kx, kh = jax.random.split(key, 3)

    B = 2
    params = make_params(kp)

    # current notes (binary piano-roll) + first timer code (all zeros), seq-major.
    notes = (jax.random.uniform(kx, (B, NUM_OUTPUT)) > 0.7).astype(jnp.float32)
    timer = jnp.zeros((B, TIME_AS_INPUT_SIZE), jnp.float32)
    x = jnp.concatenate([notes, timer], axis=-1)[None]                # (1, B, 18)
    history = (jax.random.uniform(kh, (B, HIST_LEN, NUM_OUTPUT)) > 0.8).astype(jnp.float32)

    fwd = jax.jit(history_forward)
    read, new_history = fwd(params, x, history)
    jax.block_until_ready((read, new_history))

    assert read.shape == (1, B, NUM_OUTPUT)
    assert new_history.shape == (B, HIST_LEN, NUM_OUTPUT)

    ref_read, ref_hist = jax.jit(reference_forward)(params, x, history)
    np.testing.assert_allclose(np.asarray(read), np.asarray(ref_read),
                               rtol=2e-2, atol=2e-2)      # bf16 MXU operands + approx recip
    np.testing.assert_allclose(np.asarray(new_history), np.asarray(ref_hist),
                               rtol=0, atol=0)            # shift is exact data movement
    print("KERNEL_OK")
</pallas_src>

<mosaic_0001>
module attributes {stable_mosaic.version = 11 : i64} {
  func.func @history_kernel(%arg0: memref<1x2x18xf32, #tpu.memory_space<vmem>>, %arg1: memref<2x128x12xf32, #tpu.memory_space<vmem>>, %arg2: memref<18x384xbf16, #tpu.memory_space<vmem>>, %arg3: memref<1x384xf32, #tpu.memory_space<vmem>>, %arg4: memref<128x8xbf16, #tpu.memory_space<vmem>>, %arg5: memref<1x8xf32, #tpu.memory_space<vmem>>, %arg6: memref<1x2x12xf32, #tpu.memory_space<vmem>>, %arg7: memref<2x128x12xf32, #tpu.memory_space<vmem>>) attributes {dimension_semantics = [], scalar_prefetch = 0 : i64, scratch_operands = 0 : i64, tpu.core_type = #tpu.core_type<tc>} {
    %c0 = arith.constant 0 : index
    %c0_0 = arith.constant 0 : index
    %c0_1 = arith.constant 0 : index
    %0 = vector.load %arg0[%c0, %c0_0, %c0_1] : memref<1x2x18xf32, #tpu.memory_space<vmem>>, vector<1x2x18xf32>
    %1 = vector.shape_cast %0 : vector<1x2x18xf32> to vector<2x18xf32>
    %2 = arith.truncf %1 : vector<2x18xf32> to vector<2x18xbf16>
    %c0_2 = arith.constant 0 : index
    %c0_3 = arith.constant 0 : index
    %3 = vector.load %arg2[%c0_2, %c0_3] : memref<18x384xbf16, #tpu.memory_space<vmem>>, vector<18x384xbf16>
    %cst = arith.constant dense<0.000000e+00> : vector<2x384xf32>
    %4 = tpu.matmul %2, %3, %cst {dimension_numbers = #tpu.dot_dimension_numbers<[1], [0], [0], [1], [0, 0, 1, 1], [], []>} : vector<2x18xbf16>, vector<18x384xbf16>, vector<2x384xf32> -> vector<2x384xf32>
    %c0_4 = arith.constant 0 : index
    %c0_5 = arith.constant 0 : index
    %5 = vector.load %arg3[%c0_4, %c0_5] : memref<1x384xf32, #tpu.memory_space<vmem>>, vector<1x384xf32>
    %6 = vector.broadcast %5 : vector<1x384xf32> to vector<2x384xf32>
    %7 = arith.addf %4, %6 : vector<2x384xf32>
    %8 = vector.extract_strided_slice %7 {offsets = [0, 0], sizes = [2, 128], strides = [1, 1]} : vector<2x384xf32> to vector<2x128xf32>
    %9 = arith.negf %8 : vector<2x128xf32>
    %10 = math.exp %9 : vector<2x128xf32>
    %cst_6 = arith.constant 1.000000e+00 : f32
    %11 = vector.broadcast %cst_6 : f32 to vector<2x128xf32>
    %12 = arith.addf %11, %10 : vector<2x128xf32>
    %13 = arith.divf %11, %12 : vector<2x128xf32>
    %14 = vector.extract_strided_slice %7 {offsets = [0, 128], sizes = [2, 128], strides = [1, 1]} : vector<2x384xf32> to vector<2x128xf32>
    %15 = math.tanh %14 : vector<2x128xf32>
    %16 = vector.extract_strided_slice %7 {offsets = [0, 256], sizes = [2, 128], strides = [1, 1]} : vector<2x384xf32> to vector<2x128xf32>
    %17 = arith.negf %16 : vector<2x128xf32>
    %18 = math.exp %17 : vector<2x128xf32>
    %cst_7 = arith.constant 1.000000e+00 : f32
    %19 = vector.broadcast %cst_7 : f32 to vector<2x128xf32>
    %20 = arith.addf %19, %18 : vector<2x128xf32>
    %21 = arith.divf %19, %20 : vector<2x128xf32>
    %22 = arith.mulf %13, %15 : vector<2x128xf32>
    %23 = math.tanh %22 : vector<2x128xf32>
    %24 = arith.mulf %21, %23 : vector<2x128xf32>
    %25 = arith.truncf %24 : vector<2x128xf32> to vector<2x128xbf16>
    %c0_8 = arith.constant 0 : index
    %c0_9 = arith.constant 0 : index
    %26 = vector.load %arg4[%c0_8, %c0_9] : memref<128x8xbf16, #tpu.memory_space<vmem>>, vector<128x8xbf16>
    %cst_10 = arith.constant dense<0.000000e+00> : vector<2x8xf32>
    %27 = tpu.matmul %25, %26, %cst_10 {dimension_numbers = #tpu.dot_dimension_numbers<[1], [0], [0], [1], [0, 0, 1, 1], [], []>} : vector<2x128xbf16>, vector<128x8xbf16>, vector<2x8xf32> -> vector<2x8xf32>
    %c0_11 = arith.constant 0 : index
    %c0_12 = arith.constant 0 : index
    %28 = vector.load %arg5[%c0_11, %c0_12] : memref<1x8xf32, #tpu.memory_space<vmem>>, vector<1x8xf32>
    %29 = vector.broadcast %28 : vector<1x8xf32> to vector<2x8xf32>
    %30 = arith.addf %27, %29 : vector<2x8xf32>
    %31 = math.exp %30 : vector<2x8xf32>
    %cst_13 = arith.constant dense<0.000000e+00> : vector<2xf32>
    %32 = vector.multi_reduction <add>, %31, %cst_13 [1] : vector<2x8xf32> to vector<2xf32>
    %33 = vector.shape_cast %32 : vector<2xf32> to vector<2x1xf32>
    %34 = tpu.reciprocal %33 {approx = true} : vector<2x1xf32> -> vector<2x1xf32>
    %35 = vector.broadcast %34 : vector<2x1xf32> to vector<2x8xf32>
    %36 = arith.mulf %31, %35 : vector<2x8xf32>
    %c0_14 = arith.constant 0 : index
    %c0_15 = arith.constant 0 : index
    %c0_16 = arith.constant 0 : index
    %37 = vector.load %arg1[%c0_14, %c0_15, %c0_16] : memref<2x128x12xf32, #tpu.memory_space<vmem>>, vector<1x128x12xf32>
    %38 = vector.shape_cast %37 : vector<1x128x12xf32> to vector<128x12xf32>
    %c1_i32 = arith.constant 1 : i32
    %39 = tpu.dynamic_rotate %38 by %c1_i32 dim 0 : vector<128x12xf32>, i32 -> vector<128x12xf32>
    %c0_17 = arith.constant 0 : index
    %c0_18 = arith.constant 0 : index
    %c0_19 = arith.constant 0 : index
    %40 = vector.load %arg7[%c0_17, %c0_18, %c0_19] : memref<2x128x12xf32, #tpu.memory_space<vmem>>, vector<1x128x12xf32>
    %41 = vector.shape_cast %40 : vector<1x128x12xf32> to vector<128x12xf32>
    %42 = vector.shape_cast %39 : vector<128x12xf32> to vector<1x128x12xf32>
    tpu.vector_store %arg7[%c0_17, %c0_18, %c0_19], %42 {strides = array<i32>} : memref<2x128x12xf32, #tpu.memory_space<vmem>>, vector<1x128x12xf32>,
    %43 = vector.extract_strided_slice %1 {offsets = [0, 0], sizes = [1, 12], strides = [1, 1]} : vector<2x18xf32> to vector<1x12xf32>
    %c0_20 = arith.constant 0 : index
    %c0_21 = arith.constant 0 : index
    %c0_22 = arith.constant 0 : index
    %44 = vector.load %arg7[%c0_20, %c0_21, %c0_22] : memref<2x128x12xf32, #tpu.memory_space<vmem>>, vector<1x1x12xf32>
    %45 = vector.shape_cast %44 : vector<1x1x12xf32> to vector<1x12xf32>
    %46 = vector.shape_cast %43 : vector<1x12xf32> to vector<1x1x12xf32>
    tpu.vector_store %arg7[%c0_20, %c0_21, %c0_22], %46 {strides = array<i32>} : memref<2x128x12xf32, #tpu.memory_space<vmem>>, vector<1x1x12xf32>,
    %47 = vector.extract_strided_slice %36 {offsets = [0, 0], sizes = [1, 1], strides = [1, 1]} : vector<2x8xf32> to vector<1x1xf32>
    %c0_23 = arith.constant 0 : index
    %c2 = arith.constant 2 : index
    %c0_24 = arith.constant 0 : index
    %48 = vector.load %arg1[%c0_23, %c2, %c0_24] : memref<2x128x12xf32, #tpu.memory_space<vmem>>, vector<1x1x12xf32>
    %49 = vector.shape_cast %48 : vector<1x1x12xf32> to vector<1x12xf32>
    %50 = vector.broadcast %47 : vector<1x1xf32> to vector<1x12xf32>
    %51 = arith.mulf %50, %49 : vector<1x12xf32>
    %52 = vector.extract_strided_slice %36 {offsets = [0, 1], sizes = [1, 1], strides = [1, 1]} : vector<2x8xf32> to vector<1x1xf32>
    %c0_25 = arith.constant 0 : index
    %c6 = arith.constant 6 : index
    %c0_26 = arith.constant 0 : index
    %53 = vector.load %arg1[%c0_25, %c6, %c0_26] : memref<2x128x12xf32, #tpu.memory_space<vmem>>, vector<1x1x12xf32>
    %54 = vector.shape_cast %53 : vector<1x1x12xf32> to vector<1x12xf32>
    %55 = vector.broadcast %52 : vector<1x1xf32> to vector<1x12xf32>
    %56 = arith.mulf %55, %54 : vector<1x12xf32>
    %57 = arith.addf %51, %56 : vector<1x12xf32>
    %58 = vector.extract_strided_slice %36 {offsets = [0, 2], sizes = [1, 1], strides = [1, 1]} : vector<2x8xf32> to vector<1x1xf32>
    %c0_27 = arith.constant 0 : index
    %c14 = arith.constant 14 : index
    %c0_28 = arith.constant 0 : index
    %59 = vector.load %arg1[%c0_27, %c14, %c0_28] : memref<2x128x12xf32, #tpu.memory_space<vmem>>, vector<1x1x12xf32>
    %60 = vector.shape_cast %59 : vector<1x1x12xf32> to vector<1x12xf32>
    %61 = vector.broadcast %58 : vector<1x1xf32> to vector<1x12xf32>
    %62 = arith.mulf %61, %60 : vector<1x12xf32>
    %63 = arith.addf %57, %62 : vector<1x12xf32>
    %64 = vector.extract_strided_slice %36 {offsets = [0, 3], sizes = [1, 1], strides = [1, 1]} : vector<2x8xf32> to vector<1x1xf32>
    %c0_29 = arith.constant 0 : index
    %c30 = arith.constant 30 : index
    %c0_30 = arith.constant 0 : index
    %65 = vector.load %arg1[%c0_29, %c30, %c0_30] : memref<2x128x12xf32, #tpu.memory_space<vmem>>, vector<1x1x12xf32>
    %66 = vector.shape_cast %65 : vector<1x1x12xf32> to vector<1x12xf32>
    %67 = vector.broadcast %64 : vector<1x1xf32> to vector<1x12xf32>
    %68 = arith.mulf %67, %66 : vector<1x12xf32>
    %69 = arith.addf %63, %68 : vector<1x12xf32>
    %70 = vector.extract_strided_slice %36 {offsets = [0, 4], sizes = [1, 1], strides = [1, 1]} : vector<2x8xf32> to vector<1x1xf32>
    %c0_31 = arith.constant 0 : index
    %c46 = arith.constant 46 : index
    %c0_32 = arith.constant 0 : index
    %71 = vector.load %arg1[%c0_31, %c46, %c0_32] : memref<2x128x12xf32, #tpu.memory_space<vmem>>, vector<1x1x12xf32>
    %72 = vector.shape_cast %71 : vector<1x1x12xf32> to vector<1x12xf32>
    %73 = vector.broadcast %70 : vector<1x1xf32> to vector<1x12xf32>
    %74 = arith.mulf %73, %72 : vector<1x12xf32>
    %75 = arith.addf %69, %74 : vector<1x12xf32>
    %76 = vector.extract_strided_slice %36 {offsets = [0, 5], sizes = [1, 1], strides = [1, 1]} : vector<2x8xf32> to vector<1x1xf32>
    %c0_33 = arith.constant 0 : index
    %c62 = arith.constant 62 : index
    %c0_34 = arith.constant 0 : index
    %77 = vector.load %arg1[%c0_33, %c62, %c0_34] : memref<2x128x12xf32, #tpu.memory_space<vmem>>, vector<1x1x12xf32>
    %78 = vector.shape_cast %77 : vector<1x1x12xf32> to vector<1x12xf32>
    %79 = vector.broadcast %76 : vector<1x1xf32> to vector<1x12xf32>
    %80 = arith.mulf %79, %78 : vector<1x12xf32>
    %81 = arith.addf %75, %80 : vector<1x12xf32>
    %82 = vector.extract_strided_slice %36 {offsets = [0, 6], sizes = [1, 1], strides = [1, 1]} : vector<2x8xf32> to vector<1x1xf32>
    %c0_35 = arith.constant 0 : index
    %c94 = arith.constant 94 : index
    %c0_36 = arith.constant 0 : index
    %83 = vector.load %arg1[%c0_35, %c94, %c0_36] : memref<2x128x12xf32, #tpu.memory_space<vmem>>, vector<1x1x12xf32>
    %84 = vector.shape_cast %83 : vector<1x1x12xf32> to vector<1x12xf32>
    %85 = vector.broadcast %82 : vector<1x1xf32> to vector<1x12xf32>
    %86 = arith.mulf %85, %84 : vector<1x12xf32>
    %87 = arith.addf %81, %86 : vector<1x12xf32>
    %88 = vector.extract_strided_slice %36 {offsets = [0, 7], sizes = [1, 1], strides = [1, 1]} : vector<2x8xf32> to vector<1x1xf32>
    %c0_37 = arith.constant 0 : index
    %c126 = arith.constant 126 : index
    %c0_38 = arith.constant 0 : index
    %89 = vector.load %arg1[%c0_37, %c126, %c0_38] : memref<2x128x12xf32, #tpu.memory_space<vmem>>, vector<1x1x12xf32>
    %90 = vector.shape_cast %89 : vector<1x1x12xf32> to vector<1x12xf32>
    %91 = vector.broadcast %88 : vector<1x1xf32> to vector<1x12xf32>
    %92 = arith.mulf %91, %90 : vector<1x12xf32>
    %93 = arith.addf %87, %92 : vector<1x12xf32>
    %c0_39 = arith.constant 0 : index
    %c0_40 = arith.constant 0 : index
    %c0_41 = arith.constant 0 : index
    %94 = vector.load %arg6[%c0_39, %c0_40, %c0_41] : memref<1x2x12xf32, #tpu.memory_space<vmem>>, vector<1x1x12xf32>
    %95 = vector.shape_cast %94 : vector<1x1x12xf32> to vector<1x12xf32>
    %96 = vector.shape_cast %93 : vector<1x12xf32> to vector<1x1x12xf32>
    tpu.vector_store %arg6[%c0_39, %c0_40, %c0_41], %96 {strides = array<i32>} : memref<1x2x12xf32, #tpu.memory_space<vmem>>, vector<1x1x12xf32>,
    %c1 = arith.constant 1 : index
    %c0_42 = arith.constant 0 : index
    %c0_43 = arith.constant 0 : index
    %97 = vector.load %arg1[%c1, %c0_42, %c0_43] : memref<2x128x12xf32, #tpu.memory_space<vmem>>, vector<1x128x12xf32>
    %98 = vector.shape_cast %97 : vector<1x128x12xf32> to vector<128x12xf32>
    %c1_i32_44 = arith.constant 1 : i32
    %99 = tpu.dynamic_rotate %98 by %c1_i32_44 dim 0 : vector<128x12xf32>, i32 -> vector<128x12xf32>
    %c1_45 = arith.constant 1 : index
    %c0_46 = arith.constant 0 : index
    %c0_47 = arith.constant 0 : index
    %100 = vector.load %arg7[%c1_45, %c0_46, %c0_47] : memref<2x128x12xf32, #tpu.memory_space<vmem>>, vector<1x128x12xf32>
    %101 = vector.shape_cast %100 : vector<1x128x12xf32> to vector<128x12xf32>
    %102 = vector.shape_cast %99 : vector<128x12xf32> to vector<1x128x12xf32>
    tpu.vector_store %arg7[%c1_45, %c0_46, %c0_47], %102 {strides = array<i32>} : memref<2x128x12xf32, #tpu.memory_space<vmem>>, vector<1x128x12xf32>,
    %103 = vector.extract_strided_slice %1 {offsets = [1, 0], sizes = [1, 12], strides = [1, 1]} : vector<2x18xf32> to vector<1x12xf32>
    %c1_48 = arith.constant 1 : index
    %c0_49 = arith.constant 0 : index
    %c0_50 = arith.constant 0 : index
    %104 = vector.load %arg7[%c1_48, %c0_49, %c0_50] : memref<2x128x12xf32, #tpu.memory_space<vmem>>, vector<1x1x12xf32>
    %105 = vector.shape_cast %104 : vector<1x1x12xf32> to vector<1x12xf32>
    %106 = vector.shape_cast %103 : vector<1x12xf32> to vector<1x1x12xf32>
    tpu.vector_store %arg7[%c1_48, %c0_49, %c0_50], %106 {strides = array<i32>} : memref<2x128x12xf32, #tpu.memory_space<vmem>>, vector<1x1x12xf32>,
    %107 = vector.extract_strided_slice %36 {offsets = [1, 0], sizes = [1, 1], strides = [1, 1]} : vector<2x8xf32> to vector<1x1xf32>
    %c1_51 = arith.constant 1 : index
    %c2_52 = arith.constant 2 : index
    %c0_53 = arith.constant 0 : index
    %108 = vector.load %arg1[%c1_51, %c2_52, %c0_53] : memref<2x128x12xf32, #tpu.memory_space<vmem>>, vector<1x1x12xf32>
    %109 = vector.shape_cast %108 : vector<1x1x12xf32> to vector<1x12xf32>
    %110 = vector.broadcast %107 : vector<1x1xf32> to vector<1x12xf32>
    %111 = arith.mulf %110, %109 : vector<1x12xf32>
    %112 = vector.extract_strided_slice %36 {offsets = [1, 1], sizes = [1, 1], strides = [1, 1]} : vector<2x8xf32> to vector<1x1xf32>
    %c1_54 = arith.constant 1 : index
    %c6_55 = arith.constant 6 : index
    %c0_56 = arith.constant 0 : index
    %113 = vector.load %arg1[%c1_54, %c6_55, %c0_56] : memref<2x128x12xf32, #tpu.memory_space<vmem>>, vector<1x1x12xf32>
    %114 = vector.shape_cast %113 : vector<1x1x12xf32> to vector<1x12xf32>
    %115 = vector.broadcast %112 : vector<1x1xf32> to vector<1x12xf32>
    %116 = arith.mulf %115, %114 : vector<1x12xf32>
    %117 = arith.addf %111, %116 : vector<1x12xf32>
    %118 = vector.extract_strided_slice %36 {offsets = [1, 2], sizes = [1, 1], strides = [1, 1]} : vector<2x8xf32> to vector<1x1xf32>
    %c1_57 = arith.constant 1 : index
    %c14_58 = arith.constant 14 : index
    %c0_59 = arith.constant 0 : index
    %119 = vector.load %arg1[%c1_57, %c14_58, %c0_59] : memref<2x128x12xf32, #tpu.memory_space<vmem>>, vector<1x1x12xf32>
    %120 = vector.shape_cast %119 : vector<1x1x12xf32> to vector<1x12xf32>
    %121 = vector.broadcast %118 : vector<1x1xf32> to vector<1x12xf32>
    %122 = arith.mulf %121, %120 : vector<1x12xf32>
    %123 = arith.addf %117, %122 : vector<1x12xf32>
    %124 = vector.extract_strided_slice %36 {offsets = [1, 3], sizes = [1, 1], strides = [1, 1]} : vector<2x8xf32> to vector<1x1xf32>
    %c1_60 = arith.constant 1 : index
    %c30_61 = arith.constant 30 : index
    %c0_62 = arith.constant 0 : index
    %125 = vector.load %arg1[%c1_60, %c30_61, %c0_62] : memref<2x128x12xf32, #tpu.memory_space<vmem>>, vector<1x1x12xf32>
    %126 = vector.shape_cast %125 : vector<1x1x12xf32> to vector<1x12xf32>
    %127 = vector.broadcast %124 : vector<1x1xf32> to vector<1x12xf32>
    %128 = arith.mulf %127, %126 : vector<1x12xf32>
    %129 = arith.addf %123, %128 : vector<1x12xf32>
    %130 = vector.extract_strided_slice %36 {offsets = [1, 4], sizes = [1, 1], strides = [1, 1]} : vector<2x8xf32> to vector<1x1xf32>
    %c1_63 = arith.constant 1 : index
    %c46_64 = arith.constant 46 : index
    %c0_65 = arith.constant 0 : index
    %131 = vector.load %arg1[%c1_63, %c46_64, %c0_65] : memref<2x128x12xf32, #tpu.memory_space<vmem>>, vector<1x1x12xf32>
    %132 = vector.shape_cast %131 : vector<1x1x12xf32> to vector<1x12xf32>
    %133 = vector.broadcast %130 : vector<1x1xf32> to vector<1x12xf32>
    %134 = arith.mulf %133, %132 : vector<1x12xf32>
    %135 = arith.addf %129, %134 : vector<1x12xf32>
    %136 = vector.extract_strided_slice %36 {offsets = [1, 5], sizes = [1, 1], strides = [1, 1]} : vector<2x8xf32> to vector<1x1xf32>
    %c1_66 = arith.constant 1 : index
    %c62_67 = arith.constant 62 : index
    %c0_68 = arith.constant 0 : index
    %137 = vector.load %arg1[%c1_66, %c62_67, %c0_68] : memref<2x128x12xf32, #tpu.memory_space<vmem>>, vector<1x1x12xf32>
    %138 = vector.shape_cast %137 : vector<1x1x12xf32> to vector<1x12xf32>
    %139 = vector.broadcast %136 : vector<1x1xf32> to vector<1x12xf32>
    %140 = arith.mulf %139, %138 : vector<1x12xf32>
    %141 = arith.addf %135, %140 : vector<1x12xf32>
    %142 = vector.extract_strided_slice %36 {offsets = [1, 6], sizes = [1, 1], strides = [1, 1]} : vector<2x8xf32> to vector<1x1xf32>
    %c1_69 = arith.constant 1 : index
    %c94_70 = arith.constant 94 : index
    %c0_71 = arith.constant 0 : index
    %143 = vector.load %arg1[%c1_69, %c94_70, %c0_71] : memref<2x128x12xf32, #tpu.memory_space<vmem>>, vector<1x1x12xf32>
    %144 = vector.shape_cast %143 : vector<1x1x12xf32> to vector<1x12xf32>
    %145 = vector.broadcast %142 : vector<1x1xf32> to vector<1x12xf32>
    %146 = arith.mulf %145, %144 : vector<1x12xf32>
    %147 = arith.addf %141, %146 : vector<1x12xf32>
    %148 = vector.extract_strided_slice %36 {offsets = [1, 7], sizes = [1, 1], strides = [1, 1]} : vector<2x8xf32> to vector<1x1xf32>
    %c1_72 = arith.constant 1 : index
    %c126_73 = arith.constant 126 : index
    %c0_74 = arith.constant 0 : index
    %149 = vector.load %arg1[%c1_72, %c126_73, %c0_74] : memref<2x128x12xf32, #tpu.memory_space<vmem>>, vector<1x1x12xf32>
    %150 = vector.shape_cast %149 : vector<1x1x12xf32> to vector<1x12xf32>
    %151 = vector.broadcast %148 : vector<1x1xf32> to vector<1x12xf32>
    %152 = arith.mulf %151, %150 : vector<1x12xf32>
    %153 = arith.addf %147, %152 : vector<1x12xf32>
    %c0_75 = arith.constant 0 : index
    %c1_76 = arith.constant 1 : index
    %c0_77 = arith.constant 0 : index
    %154 = vector.load %arg6[%c0_75, %c1_76, %c0_77] : memref<1x2x12xf32, #tpu.memory_space<vmem>>, vector<1x1x12xf32>
    %155 = vector.shape_cast %154 : vector<1x1x12xf32> to vector<1x12xf32>
    %156 = vector.shape_cast %153 : vector<1x12xf32> to vector<1x1x12xf32>
    tpu.vector_store %arg6[%c0_75, %c1_76, %c0_77], %156 {strides = array<i32>} : memref<1x2x12xf32, #tpu.memory_space<vmem>>, vector<1x1x12xf32>,
    return
  }
}

</mosaic_0001>

<bundles_post_ra>
// kernel: history_forward.1
= control target key start
LH: loop header
LB: loop body
LE: loop exit
PB: predicated region body
PF: predicated region fallthrough
CT: control target
= control target key end

     0   :  { %vm80_vm0 = vcmask 1040384   ;;  %v744_v3 = vmov 0   ;;  %v745_v8 = vmov 0.0   ;;  %vm746_vm1 = vmmov 0   ;;  %s1244_s0 = inlined_call_operand.vmem [shape: f32[1,2,18], index: 0, kind: input, shape index: {}]   ;;  %s1245_s1 = inlined_call_operand.vmem [shape: f32[2,128,12], index: 1, kind: input, shape index: {}]   ;;  %s1246_s2 = inlined_call_operand.vmem [shape: bf16[18,384], index: 2, kind: input, shape index: {}]   ;;  %s1247_s3 = inlined_call_operand.vmem [shape: f32[1,384], index: 3, kind: input, shape index: {}]   ;;  %s1248_s4 = inlined_call_operand.vmem [shape: bf16[128,8], index: 4, kind: input, shape index: {}]   ;;  %s1249_s5 = inlined_call_operand.vmem [shape: f32[1,8], index: 5, kind: input, shape index: {}]   ;;  %s1250_s6 = inlined_call_operand.hbm [shape: f32[1,2,12], index: 6, kind: output, shape index: {0}]   ;;  %s1251_s7 = inlined_call_operand.vmem [shape: f32[2,128,12], index: 7, kind: output, shape index: {1}]  }
   0x1   :  { %v689_v0 = vld [vmem:[%s1246_s2 + $0x4] ss:$12 sps:$4 sm:$0xff]   ;;  %v691_v1 = vld [vmem:[%s1246_s2] ss:$12 sps:$4 sm:$0xff]   ;;  %v33_v2 = vld [vmem:[%s1246_s2 + $0x18] sm:$0x11]  ;;  %122 = vmatprep.mubr.bf16.mxu1 %v744_v3  ;;  %680 = vset.pattern.permute.xlu0 %v744_v3 }
   0x2   :  { %90 = vmatprep.subr.bf16.mxu1 %v689_v0  ;;  %v572_v4 = vcombine.high %v33_v2, %v33_v2  ;;  %v571_v5 = vcombine.low %v33_v2, %v33_v2  ;;  %v807_v6 = vld [vmem:[%s1244_s0] sm:$0x3]  ;;  %649 = vmatprep.subr.bf16.mxu0 %v745_v8  ;;  %vm76_vm2 = vcmask 146432   ;;  %v694_v11 = vld [vmem:[%s1246_s2 + $0x8] ss:$12 sps:$4 sm:$0xff]  }
   0x3   :  { %91 = vmatpush1.bf16.msra.mxu1 %v691_v1  ;;  %665 = vmatprep.mubr.msk.bf16.mxu0 %vm746_vm1, %v745_v8  ;;  %v28_v9 = vpack.c.bf16 %v807_v6, %v807_v6  ;;  %v695_v10 = vld [vmem:[%s1246_s2 + $0x20] ss:$0 sps:$4 sm:$0x11]  }
   0x4   :  { %574 = vmatprep.subr.msk.bf16.mxu1 %vm80_vm0, %v572_v4  ;;  %v82_v7 = vsel %vm80_vm0, %v571_v5, 0 }
   0x7   :  { %93 = vmatpush1.bf16.msra.mxu1 %v82_v7 }
   0x8   :  { %641 = vmatprep.subr.bf16.mxu1 %v745_v8 }
   0xa   :  { %575 = vmatmul.mubr.msk.bf16.vlgmr.msra.gmra.mrb[0].mxu1 %vm76_vm2, %v28_v9 }
   0xb   :  { %642 = vmatpush3.bf16.msra.mxu1 %v694_v11  ;;  %645 = vmatprep.mubr.msk.bf16.mxu1 %vm746_vm1, %v745_v8 }
   0xc   :  { %13 = vsyncpa [#allocation3], 0  ;;  %643 = vmatprep.subr.bf16.mxu1 %v745_v8  ;;  %v88_v12 = vsel %vm80_vm0, %v695_v10, 0  ;;  %v696_v13 = vld [vmem:[%s1248_s4] sm:$0xff]   ;;  %v697_v14 = vld [vmem:[%s1248_s4 + $0x8] sm:$0xff]   ;;  %v37_v21 = vlaneseq  ;;  %vm301_vm3 = vcmask 58368  }
   0xd   :  { %650 = vmatpush3.bf16.msra.mxu0 %v696_v13  ;;  %v698_v15 = vld [vmem:[%s1248_s4 + $0x10] sm:$0xff]   ;;  %v699_v16 = vld [vmem:[%s1248_s4 + $0x18] sm:$0xff]   ;;  %v700_v17 = vld [vmem:[%s1248_s4 + $0x20] sm:$0xff]   ;;  %v747_v63 = vmov 1   ;;  %v748_v3 = vmov 2   ;;  %v749_v4 = vmov 7  }
   0xe   :  { %651 = vmatprep.subr.bf16.mxu0 %v745_v8  ;;  %v701_v18 = vld [vmem:[%s1248_s4 + $0x28] sm:$0xff]   ;;  %v702_v19 = vld [vmem:[%s1248_s4 + $0x30] sm:$0xff]   ;;  %v703_v20 = vld [vmem:[%s1248_s4 + $0x38] sm:$0xff]   ;;  %v844_v22 = vshrl.u32 %v37_v21, 7  ;;  %681 = vset.pattern.permute.xlu1 %v747_v63  ;;  %v750_v5 = vmov 3   ;;  %v751_v7 = vmov 4  }
   0xf   :  { %644 = vmatpush3.bf16.msra.mxu1 %v88_v12  ;;  %v35_v24 = vld [vmem:[%s1247_s3] sm:$0x7]  ;;  %v322_v11 = vld [vmem:[%s1245_s1 + $0x78] sm:$0xff]  ;;  %v308_v13 = vld [vmem:[%s1245_s1 + $0x8] sm:$0xff]  ;;  %vm358_vm5 = vcmask 97280   ;;  %vm375_vm6 = vcmask 90112  }
  0x10   :  { %v39_v23 = vsub.s32 0, %v844_v22  ;;  %v47_v29 = vsub.s32 2, %v844_v22  ;;  %v43_v33 = vsub.s32 1, %v844_v22  ;;  %v579_v54 = vld [vmem:[%s1249_s5] ss:$0 sm:$0xff]  ;;  %vm341_vm4 = vcmp.lt.s32.totalorder %v844_v22, 1 }
  0x11   :  { %652 = vmatpush3.bf16.msra.mxu0 %v697_v14  ;;  %v307_v10 = vld [vmem:[%s1245_s1] sm:$0xff]  ;;  %v309_v14 = vld [vmem:[%s1245_s1 + $0x10] sm:$0xff]  ;;  %vm500_vm7 = vcmask 91137   ;;  %s754_s26 = smov [#allocation2]  }
  0x12   :  { %646 = vmatmul.mubr.msk.bf16.vlgmr.msra.gmra.mrb[4].mxu1 %vm76_vm2, %v28_v9  ;;  %653 = vmatprep.subr.bf16.mxu0 %v745_v8  ;;  %v40_v25 = vrot.slane %v35_v24, %v39_v23  ;;  %v48_v34 = vrot.slane %v35_v24, %v47_v29  ;;  %v44_v36 = vrot.slane %v35_v24, %v43_v33  ;;  %v753_v9 = vmov 6   ;;  %v865_v12 = vld [vmem:[%s1245_s1 + $0x80] sm:$0xff]  ;;  %v313_v21 = vld [vmem:[%s1245_s1 + $0x30] sm:$0xff]  ;;  %s556_s27 = sshll.u32 %s754_s26, 4  ;;  %s557_s27 = int_to_ptr.vmem [resolvable:$true] %s556_s27 }
  0x13   :  { %v324_v23 = vrot.slane %v308_v13, 7  ;;  %v325_v24 = vrot.slane %v309_v14, 7  ;;  %v317_v33 = vld [vmem:[%s1245_s1 + $0x50] sm:$0xff]  ;;  %v603_v13 = vld [vmem:[%s1245_s1 + $0xf8] sm:$0xff]  ;;  %s720_s28 = scalar_lea.vmem %s557_s27, 32  ;;  %p725_p1 = scmp.lt.s32.totalorder %s557_s27, %s557_s27 }
  0x14   :  { %p721_p0 = scmp.ne.s32.totalorder %s557_s27, %s720_s28  ;;  %p726_p2 = scmp.lt.s32.totalorder %s720_s28, %s720_s28 }
  0x15   :  { %654 = vmatpush3.bf16.msra.mxu0 %v698_v15  ;;  %v310_v15 = vld [vmem:[%s1245_s1 + $0x18] sm:$0xff] }
  0x16   :  { %655 = vmatprep.subr.bf16.mxu0 %v745_v8  ;;  %p727_p3 = por %p726_p2, %p725_p1 }
  0x18   :  { %p728_p4 = pnand %p727_p3, %p721_p0 }
  0x19   :  { %656 = vmatpush3.bf16.msra.mxu0 %v699_v16  ;;  %v323_v16 = vrot.slane %v307_v10, 7  ;;  %v601_v10 = vld [vmem:[%s1245_s1 + $0xe8] sm:$0xff] }
  0x1a   :  { %657 = vmatprep.subr.bf16.mxu0 %v745_v8 }
  0x1d   :  { %658 = vmatpush3.bf16.msra.mxu0 %v700_v17  ;;  %v338_v17 = vrot.slane %v322_v11, 7  ;;  %v602_v11 = vld [vmem:[%s1245_s1 + $0xf0] sm:$0xff] }
  0x1e   :  { %659 = vmatprep.subr.bf16.mxu0 %v745_v8 }
  0x21   :  { %660 = vmatpush3.bf16.msra.mxu0 %v701_v18  ;;  %v451_v18 = vrot.slane %v865_v12, 7 }
  0x22   :  { %661 = vmatprep.subr.bf16.mxu0 %v745_v8 }
  0x25   :  { %662 = vmatpush3.bf16.msra.mxu0 %v702_v19  ;;  %v311_v19 = vld [vmem:[%s1245_s1 + $0x20] sm:$0xff] }
  0x26   :  { %663 = vmatprep.subr.bf16.mxu0 %v745_v8  ;;  %v752_v8 = vmov 5   ;;  %v327_v29 = vrot.slane %v311_v19, 7 }
  0x29   :  { %664 = vmatpush3.bf16.msra.mxu0 %v703_v20  ;;  %v312_v20 = vld [vmem:[%s1245_s1 + $0x28] sm:$0xff] }
  0xdd   :  { %v124_v26 = vpop.f32.mrb[0].mxu1 }
  0xde   :  { %v125_v27 = vadd.f32 %v124_v26, %v40_v25  ;;  %v126_v28 = vpop.f32.mrb[1].mxu1  ;;  %v326_v25 = vrot.slane %v310_v15, 7  ;;  %v314_v26 = vld [vmem:[%s1245_s1 + $0x38] sm:$0xff] }
  0xdf   :  { %v128_v30 = vpop.f32.mrb[2].mxu1  ;;  %v127_v42 = vadd.f32 %v126_v28, %v44_v36  ;;  %v316_v28 = vld [vmem:[%s1245_s1 + $0x48] sm:$0xff]  ;;  %v330_v36 = vrot.slane %v314_v26, 7 }
  0xe0   :  { %v577_v31 = vmul.f32 -1.442695, %v125_v27  ;;  %v129_v32 = vpop.f32.mrb[3].mxu1  ;;  %v315_v27 = vld [vmem:[%s1245_s1 + $0x40] sm:$0xff]  ;;  %v328_v30 = vrot.slane %v312_v20, 7 }
  0xe1   :  { %v357_v32 = vsel %vm341_vm4, %v338_v17, %v323_v16 }
  0xe2   :  { %704 = vpow2.f32 %v577_v31  ;;  %v329_v31 = vrot.slane %v313_v21, 7  ;;  %359 = vst.msk [vmem:[%s1251_s7] sm:$0xff] %vm358_vm5, %v357_v32 }
  0xe3   :  { %376 = vst.msk [vmem:[%s1251_s7] sm:$0x1] %vm375_vm6, %v807_v6 }
  0xe5   :  { %v165_v35 = vpop.f32.mrb[4].mxu1 }
  0xe6   :  { %v166_v37 = vadd.f32 %v165_v35, %v48_v34  ;;  %v647_v38 = vpop.f32.mrb[5].mxu1  ;;  %v318_v34 = vld [vmem:[%s1245_s1 + $0x58] sm:$0xff]  ;;  %v319_v35 = vld [vmem:[%s1245_s1 + $0x60] sm:$0xff] }
  0xe7   :  { %v168_v39 = vpop.f32.mrb[6].mxu1  ;;  %v332_v38 = vrot.slane %v316_v28, 7  ;;  %v464_v28 = vrot.slane %v601_v10, 7 }
  0xe8   :  { %v578_v40 = vmul.f32 -1.442695, %v166_v37  ;;  %v648_v41 = vpop.f32.mrb[7].mxu1  ;;  %v331_v37 = vrot.slane %v315_v27, 7  ;;  %v354_v39 = vsel %vm341_vm4, %v325_v24, %v326_v25 }
  0xe9   :  { %v321_v41 = vld [vmem:[%s1245_s1 + $0x70] sm:$0xff]  ;;  %362 = vst.msk [vmem:[%s1251_s7 + $0x18] sm:$0xff] %vm358_vm5, %v354_v39 }
  0xea   :  { %706 = vpow2.f32 %v578_v40  ;;  %v320_v40 = vld [vmem:[%s1245_s1 + $0x68] sm:$0xff] }
  0xeb   :  { %708 = vtanh.f32 %v127_v42  ;;  %v333_v42 = vrot.slane %v317_v33, 7 }
  0xec   :  { %v705_v43 = vpop.eup %704 }
  0xed   :  { %v174_v44 = vadd.f32 1.0, %v705_v43  ;;  %v334_v43 = vrot.slane %v318_v34, 7 }
  0xef   :  { %710 = vrcp.f32 %v174_v44  ;;  %v335_v44 = vrot.slane %v319_v35, 7 }
  0xf4   :  { %v707_v45 = vpop.eup %706 }
  0xf5   :  { %v181_v46 = vadd.f32 1.0, %v707_v45  ;;  %v709_v47 = vpop.eup %708  ;;  %v351_v45 = vsel %vm341_vm4, %v328_v30, %v329_v31 }
  0xf6   :  { %365 = vst.msk [vmem:[%s1251_s7 + $0x30] sm:$0xff] %vm358_vm5, %v351_v45 }
  0xf7   :  { %712 = vrcp.f32 %v181_v46  ;;  %v919_v46 = vld [vmem:[%s1245_s1 + $0x88] sm:$0xff] }
  0xf8   :  { %v452_v14 = vrot.slane %v919_v46, 7 }
  0xf9   :  { %v711_v48 = vpop.eup %710 }
  0xfa   :  { %v184_v49 = vmul.f32 %v711_v48, %v709_v47  ;;  %v336_v47 = vrot.slane %v320_v40, 7  ;;  %v337_v48 = vrot.slane %v321_v41, 7  ;;  %v481_v45 = vsel %vm341_vm4, %v451_v18, %v452_v14 }
  0xfb   :  { %605 = vst.msk [vmem:[%s1251_s7 + $0x88] sm:$0xff] %vm358_vm5, %v481_v45 }
  0xfc   :  { %714 = vtanh.f32 %v184_v49  ;;  %v348_v49 = vsel %vm341_vm4, %v331_v37, %v332_v38  ;;  %v344_v63 = vsel %vm341_vm4, %v335_v44, %v336_v47 }
  0xfd   :  { %368 = vst.msk [vmem:[%s1251_s7 + $0x48] sm:$0xff] %vm358_vm5, %v348_v49  ;;  %372 = vst.msk [vmem:[%s1251_s7 + $0x68] sm:$0xff] %vm358_vm5, %v344_v63  ;;  %v623_v49 = vld [vmem:[%s1245_s1 + $0x8e] sm:$0x1] }
 0x101   :  { %v713_v50 = vpop.eup %712 }
 0x106   :  { %v715_v51 = vpop.eup %714 }
 0x107   :  { %v186_v52 = vmul.f32 %v715_v51, %v713_v50  ;;  %v349_v50 = vsel %vm341_vm4, %v330_v36, %v331_v37  ;;  %v928_v51 = vld [vmem:[%s1245_s1 + $0x90] sm:$0xff] }
 0x108   :  { %367 = vst.msk [vmem:[%s1251_s7 + $0x40] sm:$0xff] %vm358_vm5, %v349_v50  ;;  %v453_v15 = vrot.slane %v928_v51, 7 }
 0x109   :  { %v187_v53 = vpack.c.bf16 %v186_v52, %v186_v52  ;;  %v933_v52 = vld [vmem:[%s1245_s1 + $0x98] sm:$0xff] }
 0x10b   :  { %666 = vmatmul.mubr.bf16.vlgmr.msra.gmra.mrb[0].mxu0 %v187_v53  ;;  %v938_v53 = vld [vmem:[%s1245_s1 + $0xa0] sm:$0xff] }
 0x1de   :  { %v293_v55 = vpop.f32.mrb[0].mxu0 }
 0x1df   :  { %v294_v56 = vadd.f32 %v579_v54, %v293_v55  ;;  %v667_v57 = vpop.f32.mrb[1].mxu0  ;;  %v345_v54 = vsel %vm341_vm4, %v334_v43, %v335_v44  ;;  %v346_v55 = vsel %vm341_vm4, %v333_v42, %v334_v43  ;;  %v480_v44 = vsel %vm341_vm4, %v452_v14, %v453_v15 }
 0x1e0   :  { %v296_v58 = vpop.f32.mrb[2].mxu0  ;;  %v350_v57 = vsel %vm341_vm4, %v329_v31, %v330_v36  ;;  %370 = vst.msk [vmem:[%s1251_s7 + $0x58] sm:$0xff] %vm358_vm5, %v346_v55  ;;  %371 = vst.msk [vmem:[%s1251_s7 + $0x60] sm:$0xff] %vm358_vm5, %v345_v54  ;;  %v515_v55 = vrot.slane %v623_v49, 7 }
 0x1e1   :  { %v299_v59 = vmul.f32 1.442695, %v294_v56  ;;  %v668_v60 = vpop.f32.mrb[3].mxu0  ;;  %v347_v56 = vsel %vm341_vm4, %v332_v38, %v333_v42  ;;  %v951_v58 = vld [vmem:[%s1245_s1 + $0xa8] sm:$0xff]  ;;  %366 = vst.msk [vmem:[%s1251_s7 + $0x38] sm:$0xff] %vm358_vm5, %v350_v57  ;;  %606 = vst.msk [vmem:[%s1251_s7 + $0x90] sm:$0xff] %vm358_vm5, %v480_v44 }
 0x1e2   :  { %v961_v60 = vld [vmem:[%s1245_s1 + $0xb8] sm:$0xff]  ;;  %369 = vst.msk [vmem:[%s1251_s7 + $0x50] sm:$0xff] %vm358_vm5, %v347_v56  ;;  %v456_v19 = vrot.slane %v951_v58, 7  ;;  %v391_v57 = vld [vmem:[%s1245_s1 + $0xe] sm:$0x1] }
 0x1e3   :  { %716 = vpow2.f32 %v299_v59  ;;  %v956_v59 = vld [vmem:[%s1245_s1 + $0xb0] sm:$0xff]  ;;  %v458_v21 = vrot.slane %v961_v60, 7 }
 0x1e4   :  { %v457_v20 = vrot.slane %v956_v59, 7  ;;  %v625_v59 = vld [vmem:[%s1245_s1 + $0xae] sm:$0x1] }
 0x1e6   :  { %v475_v39 = vsel %vm341_vm4, %v457_v20, %v458_v21  ;;  %v476_v40 = vsel %vm341_vm4, %v456_v19, %v457_v20 }
 0x1e7   :  { %610 = vst.msk [vmem:[%s1251_s7 + $0xb0] sm:$0xff] %vm358_vm5, %v476_v40  ;;  %611 = vst.msk [vmem:[%s1251_s7 + $0xb8] sm:$0xff] %vm358_vm5, %v475_v39 }
 0x1ed   :  { %v717_v61 = vpop.eup %716 }
 0x1ee   :  { %v302_v62 = vsel %vm301_vm3, %v717_v61, 0.0 }
 0x1ef   :  { %303 = vadd.xlane.f32.xlu0 %v302_v62  ;;  %v343_v62 = vsel %vm341_vm4, %v336_v47, %v337_v48  ;;  %v621_v47 = vld [vmem:[%s1245_s1 + $0x82] sm:$0x1] }
 0x1f0   :  { %373 = vst.msk [vmem:[%s1251_s7 + $0x70] sm:$0xff] %vm358_vm5, %v343_v62  ;;  %v504_v51 = vrot.slane %v621_v47, 7 }
 0x27c   :  { %v304_v0 = vpop.xlane.xlu0 %303 }
 0x27d   :  { %718 = vrcp.f32 %v304_v0  ;;  %v352_v0 = vsel %vm341_vm4, %v327_v29, %v328_v30  ;;  %v466_v30 = vrot.slane %v603_v13, 7 }
 0x27e   :  { %364 = vst.msk [vmem:[%s1251_s7 + $0x28] sm:$0xff] %vm358_vm5, %v352_v0  ;;  %v626_v0 = vld [vmem:[%s1245_s1 + $0xbe] sm:$0x1] }
 0x27f   :  { %v482_v46 = vsel %vm341_vm4, %v466_v30, %v451_v18  ;;  %v622_v18 = vld [vmem:[%s1245_s1 + $0x86] sm:$0x1] }
 0x280   :  { %604 = vst.msk [vmem:[%s1251_s7 + $0x80] sm:$0xff] %vm358_vm5, %v482_v46  ;;  %v509_v50 = vrot.slane %v622_v18, 7 }
 0x281   :  { %620 = vst.msk [vmem:[%s1251_s7 + $0x7f] sm:$0x2] %vm500_vm7, %v807_v6  ;;  %v624_v6 = vld [vmem:[%s1245_s1 + $0x9e] sm:$0x1] }
 0x282   :  { %v521_v58 = vrot.slane %v624_v6, 7 }
 0x287   :  { %v719_v1 = vpop.eup %718 }
 0x288   :  { %v306_v2 = vmul.f32 %v719_v1, %v717_v61  ;;  %v342_v61 = vsel %vm341_vm4, %v337_v48, %v338_v17  ;;  %v596_v1 = vld [vmem:[%s1245_s1 + $0xc0] sm:$0xff]  ;;  %v455_v17 = vrot.slane %v938_v53, 7 }
 0x289   :  { %374 = vst.msk [vmem:[%s1251_s7 + $0x78] sm:$0xff] %vm358_vm5, %v342_v61  ;;  %v377_v53 = vld [vmem:[%s1245_s1 + $0x2] sm:$0x1] }
 0x28a   :  { %386 = vperm.xlu1 %681, %v306_v2   ;;  %380 = vperm.xlu0 %680, %v306_v2   ;;  %v477_v41 = vsel %vm341_vm4, %v455_v17, %v456_v19 }
 0x28b   :  { %609 = vst.msk [vmem:[%s1251_s7 + $0xa8] sm:$0xff] %vm358_vm5, %v477_v41 }
 0x28e   :  { %682 = vset.pattern.permute.xlu1 %v748_v3  ;;  %688 = vset.pattern.permute.xlu0 %v749_v4  ;;  %v598_v3 = vld [vmem:[%s1245_s1 + $0xd0] sm:$0xff] }
 0x28f   :  { %393 = vperm.xlu1 %682, %v306_v2  }
 0x293   :  { %683 = vset.pattern.permute.xlu1 %v750_v5  ;;  %v355_v5 = vsel %vm341_vm4, %v324_v23, %v325_v24 }
 0x294   :  { %400 = vperm.xlu1 %683, %v306_v2   ;;  %361 = vst.msk [vmem:[%s1251_s7 + $0x10] sm:$0xff] %vm358_vm5, %v355_v5  ;;  %v627_v5 = vld [vmem:[%s1245_s1 + $0xde] sm:$0x1] }
 0x298   :  { %684 = vset.pattern.permute.xlu1 %v751_v7  ;;  %v356_v7 = vsel %vm341_vm4, %v323_v16, %v324_v23  ;;  %v454_v16 = vrot.slane %v933_v52, 7  ;;  %v459_v23 = vrot.slane %v596_v1, 7  ;;  %v384_v52 = vld [vmem:[%s1245_s1 + $0x6] sm:$0x1]  ;;  %v398_v1 = vld [vmem:[%s1245_s1 + $0x1e] sm:$0x1] }
 0x299   :  { %407 = vperm.xlu1 %684, %v306_v2   ;;  %360 = vst.msk [vmem:[%s1251_s7 + $0x8] sm:$0xff] %vm358_vm5, %v356_v7  ;;  %v405_v7 = vld [vmem:[%s1245_s1 + $0x2e] sm:$0x1] }
 0x29a   :  { %v474_v34 = vsel %vm341_vm4, %v458_v21, %v459_v23  ;;  %v478_v42 = vsel %vm341_vm4, %v454_v16, %v455_v17  ;;  %v479_v43 = vsel %vm341_vm4, %v453_v15, %v454_v16  ;;  %v412_v15 = vld [vmem:[%s1245_s1 + $0x3e] sm:$0x1]  ;;  %v539_v16 = vrot.slane %v627_v5, 7 }
 0x29b   :  { %612 = vst.msk [vmem:[%s1251_s7 + $0xc0] sm:$0xff] %vm358_vm5, %v474_v34  ;;  %608 = vst.msk [vmem:[%s1251_s7 + $0xa0] sm:$0xff] %vm358_vm5, %v478_v42 }
 0x29c   :  { %607 = vst.msk [vmem:[%s1251_s7 + $0x98] sm:$0xff] %vm358_vm5, %v479_v43 }
 0x29d   :  { %685 = vset.pattern.permute.xlu1 %v752_v8  ;;  %v599_v8 = vld [vmem:[%s1245_s1 + $0xd8] sm:$0xff] }
 0x29e   :  { %414 = vperm.xlu1 %685, %v306_v2   ;;  %v462_v26 = vrot.slane %v599_v8, 7  ;;  %v533_v8 = vrot.slane %v626_v0, 7 }
 0x2a2   :  { %686 = vset.pattern.permute.xlu1 %v753_v9  ;;  %v600_v9 = vld [vmem:[%s1245_s1 + $0xe0] sm:$0xff] }
 0x2a3   :  { %421 = vperm.xlu1 %686, %v306_v2   ;;  %v463_v27 = vrot.slane %v600_v9, 7 }
 0x2a5   :  { %v469_v37 = vsel %vm341_vm4, %v463_v27, %v464_v28  ;;  %v470_v38 = vsel %vm341_vm4, %v462_v26, %v463_v27 }
 0x2a6   :  { %616 = vst.msk [vmem:[%s1251_s7 + $0xe0] sm:$0xff] %vm358_vm5, %v470_v38  ;;  %617 = vst.msk [vmem:[%s1251_s7 + $0xe8] sm:$0xff] %vm358_vm5, %v469_v37 }
 0x2a7   :  { %687 = vset.pattern.permute.xlu1 %v749_v4  ;;  %v353_v4 = vsel %vm341_vm4, %v326_v25, %v327_v29  ;;  %v461_v25 = vrot.slane %v598_v3, 7  ;;  %v465_v29 = vrot.slane %v602_v11, 7 }
 0x2a8   :  { %428 = vperm.xlu1 %687, %v306_v2   ;;  %v597_v2 = vld [vmem:[%s1245_s1 + $0xc8] sm:$0xff]  ;;  %363 = vst.msk [vmem:[%s1251_s7 + $0x20] sm:$0xff] %vm358_vm5, %v353_v4  ;;  %v527_v4 = vrot.slane %v625_v59, 7 }
 0x2a9   :  { %v460_v24 = vrot.slane %v597_v2, 7  ;;  %v471_v31 = vsel %vm341_vm4, %v461_v25, %v462_v26  ;;  %v467_v35 = vsel %vm341_vm4, %v465_v29, %v466_v30  ;;  %v468_v36 = vsel %vm341_vm4, %v464_v28, %v465_v29 }
 0x2aa   :  { %615 = vst.msk [vmem:[%s1251_s7 + $0xd8] sm:$0xff] %vm358_vm5, %v471_v31  ;;  %618 = vst.msk [vmem:[%s1251_s7 + $0xf0] sm:$0xff] %vm358_vm5, %v468_v36 }
 0x2ab   :  { %v472_v32 = vsel %vm341_vm4, %v460_v24, %v461_v25  ;;  %v473_v33 = vsel %vm341_vm4, %v459_v23, %v460_v24  ;;  %619 = vst.msk [vmem:[%s1251_s7 + $0xf8] sm:$0xff] %vm358_vm5, %v467_v35  ;;  %v628_v23 = vld [vmem:[%s1245_s1 + $0xfe] sm:$0x1] }
 0x2ac   :  { %613 = vst.msk [vmem:[%s1251_s7 + $0xc8] sm:$0xff] %vm358_vm5, %v473_v33  ;;  %614 = vst.msk [vmem:[%s1251_s7 + $0xd0] sm:$0xff] %vm358_vm5, %v472_v32  ;;  %v419_v24 = vld [vmem:[%s1245_s1 + $0x5e] sm:$0x1]  ;;  %v545_v30 = vrot.slane %v628_v23, 7 }
 0x2ad   :  { %v426_v35 = vld [vmem:[%s1245_s1 + $0x7e] sm:$0x1] }
 0x309   :  { %v387_v22 = vpop.permute.xlu1 %386  ;;  %v381_v54 = vpop.permute.xlu0 %380 }
 0x30a   :  { %v389_v60 = vmul.f32 %v387_v22, %v384_v52  ;;  %v511_v61 = vmul.f32 %v509_v50, %v387_v22  ;;  %v383_v62 = vmul.f32 %v381_v54, %v377_v53  ;;  %v506_v63 = vmul.f32 %v504_v51, %v381_v54 }
 0x30c   :  { %v390_v10 = vadd.f32 %v389_v60, %v383_v62  ;;  %v512_v11 = vadd.f32 %v511_v61, %v506_v63 }
 0x30e   :  { %v394_v12 = vpop.permute.xlu1 %393 }
 0x30f   :  { %v396_v2 = vmul.f32 %v394_v12, %v391_v57  ;;  %v517_v3 = vmul.f32 %v515_v55, %v394_v12 }
 0x311   :  { %v397_v17 = vadd.f32 %v396_v2, %v390_v10  ;;  %v518_v19 = vadd.f32 %v517_v3, %v512_v11 }
 0x313   :  { %v401_v48 = vpop.permute.xlu1 %400 }
 0x314   :  { %v403_v13 = vmul.f32 %v401_v48, %v398_v1  ;;  %v523_v14 = vmul.f32 %v521_v58, %v401_v48 }
 0x316   :  { %v404_v25 = vadd.f32 %v403_v13, %v397_v17  ;;  %v524_v26 = vadd.f32 %v523_v14, %v518_v19 }
 0x318   :  { %v408_v56 = vpop.permute.xlu1 %407 }
 0x319   :  { %v410_v20 = vmul.f32 %v408_v56, %v405_v7  ;;  %v529_v21 = vmul.f32 %v527_v4, %v408_v56 }
 0x31b   :  { %v411_v31 = vadd.f32 %v410_v20, %v404_v25  ;;  %v530_v32 = vadd.f32 %v529_v21, %v524_v26 }
 0x31d   :  { %v415_v9 = vpop.permute.xlu1 %414 }
 0x31e   :  { %v417_v27 = vmul.f32 %v415_v9, %v412_v15  ;;  %v535_v28 = vmul.f32 %v533_v8, %v415_v9 }
 0x320   :  { %v418_v36 = vadd.f32 %v417_v27, %v411_v31  ;;  %v536_v37 = vadd.f32 %v535_v28, %v530_v32 }
 0x322   :  { %v422_v29 = vpop.permute.xlu1 %421 }
 0x323   :  { %v424_v33 = vmul.f32 %v422_v29, %v419_v24  ;;  %v541_v34 = vmul.f32 %v539_v16, %v422_v29 }
 0x325   :  { %v425_v39 = vadd.f32 %v424_v33, %v418_v36  ;;  %v542_v40 = vadd.f32 %v541_v34, %v536_v37 }
 0x327   :  { %v429_v38 = vpop.permute.xlu1 %428 }
 0x328   :  { %v431_v41 = vmul.f32 %v429_v38, %v426_v35  ;;  %v547_v42 = vmul.f32 %v545_v30, %v429_v38 }
 0x32a   :  { %v432_v43 = vadd.f32 %v431_v41, %v425_v39  ;;  %v548_v44 = vadd.f32 %v547_v42, %v542_v40 }
 0x32c   :  { %433 = vst.msk [vmem:[#allocation2] sm:$0x1] %vm375_vm6, %v432_v43 }
 0x32d   :  { %549 = vst.msk [vmem:[#allocation2] sm:$0x2] %vm500_vm7, %v548_v44 }
 0x32e   :  { %731 = shalt.err (!%p728_p4)
}
 0x32f   :  { %s732_s4 = scalar_lea.hbm %s1250_s6, 32 }
 0x330   :  { %p733_p5 = scmp.ne.s32.totalorder %s1250_s6, %s732_s4  ;;  %p736_p6 = scmp.lt.u32.totalorder %s732_s4, %s1250_s6 }
 0x332   :  { %p738_p7 = pnand %p736_p6, %p733_p5 }
 0x334   :  { %741 = shalt.err (!%p738_p7)
}
 0x335   :  { %559 = dma.vmem_to_hbm [thread:$0]  %s557_s27, 32, %s1250_s6, [#allocation3]  }
 0x336   :  { %742 = dma.done.wait [#allocation3], 32  }
 0x337   :  { %743 = vsyncadd [#allocation3], 4294967264 }
 0x338   :  { %567 = vsyncpa [#allocation3], 1 }

</bundles_post_ra>
